<compile_context>
chip_gen: v7x
topology: tpu7x:2x2x1
jax: 0.10.0
libtpu: 0.0.40
codegen_flags: <defaults>
</compile_context>

<pallas_src>
import jax
import jax.numpy as jnp
from jax.experimental import pallas as pl
from jax.experimental.pallas import tpu as pltpu


def _round_up(x, m):
    return ((x + m - 1) // m) * m


# Max batch-tile rows (f32 activations).  512 keeps double-buffered x/h/y
# under ~3 MiB, comfortably inside v7x's 32 MiB default scoped VMEM while
# still amortizing the ~0.35 us per-grid-step overhead.
_TB_MAX = 512
_HIDDEN = 256


# ----------------------------------------------------------------------------
# Pallas kernels: fused MLP forward (fc1 -> ReLU -> fc2 -> ReLU -> heads)
# ----------------------------------------------------------------------------
def _mlp_core(x_ref, w1_ref, b1_ref, w2_ref, b2_ref, wl_ref, bl_ref):
    # Dots run in the weight dtype (bf16 or f32) with f32 MXU accumulation;
    # bias add / ReLU tail stays f32 (v5e has no bf16 VPU path).
    cdt = w1_ref.dtype
    x = x_ref[...].astype(cdt)

    h1 = jnp.dot(x, w1_ref[...], preferred_element_type=jnp.float32)
    h1 = jnp.maximum(h1 + b1_ref[...], 0.0)
    # TODO(synk): training-mode dropout (p=0.2 / p=0.5) not applied; forward is
    # implemented in eval semantics where Dropout is the identity.

    h2 = jnp.dot(h1.astype(cdt), w2_ref[...], preferred_element_type=jnp.float32)
    h2 = jnp.maximum(h2 + b2_ref[...], 0.0)

    y = jnp.dot(h2.astype(cdt), wl_ref[...], preferred_element_type=jnp.float32)
    y = y + bl_ref[...]
    return h2, y


def _fused_mlp_kernel_hy(x_ref, w1_ref, b1_ref, w2_ref, b2_ref, wl_ref, bl_ref,
                         h_ref, y_ref):
    h2, y = _mlp_core(x_ref, w1_ref, b1_ref, w2_ref, b2_ref, wl_ref, bl_ref)
    h_ref[...] = h2.astype(h_ref.dtype)
    y_ref[...] = y.astype(y_ref.dtype)


def _fused_mlp_kernel_y(x_ref, w1_ref, b1_ref, w2_ref, b2_ref, wl_ref, bl_ref,
                        y_ref):
    _, y = _mlp_core(x_ref, w1_ref, b1_ref, w2_ref, b2_ref, wl_ref, bl_ref)
    y_ref[...] = y.astype(y_ref.dtype)


def fused_forward(x2d, w1, b1, w2, b2, wl, bl, *, tb, return_h=True):
    """Batch-tiled single-kernel forward on padded (aligned) operands.

    x2d: (Bp, INp) with Bp a multiple of `tb` and INp a multiple of 128.
    Returns (h_pad, y_pad) if return_h else y_pad.
    """
    Bp, INp = x2d.shape
    H = w1.shape[1]
    OUTp = wl.shape[1]
    assert Bp % tb == 0

    # x / h / y are tiled along the batch axis; weights & biases use a constant
    # index_map so they stay VMEM-resident across every grid step.
    in_specs = [
        pl.BlockSpec((tb, INp), lambda i: (i, 0)),
        pl.BlockSpec((INp, H), lambda i: (0, 0)),
        pl.BlockSpec((1, H), lambda i: (0, 0)),
        pl.BlockSpec((H, H), lambda i: (0, 0)),
        pl.BlockSpec((1, H), lambda i: (0, 0)),
        pl.BlockSpec((H, OUTp), lambda i: (0, 0)),
        pl.BlockSpec((1, OUTp), lambda i: (0, 0)),
    ]
    y_shape = jax.ShapeDtypeStruct((Bp, OUTp), jnp.float32)
    y_spec = pl.BlockSpec((tb, OUTp), lambda i: (i, 0))

    if return_h:
        kernel = _fused_mlp_kernel_hy
        out_shape = (jax.ShapeDtypeStruct((Bp, H), jnp.float32), y_shape)
        out_specs = (pl.BlockSpec((tb, H), lambda i: (i, 0)), y_spec)
    else:
        kernel = _fused_mlp_kernel_y
        out_shape = y_shape
        out_specs = y_spec

    return pl.pallas_call(
        kernel,
        out_shape=out_shape,
        grid=(Bp // tb,),
        in_specs=in_specs,
        out_specs=out_specs,
        compiler_params=pltpu.CompilerParams(
            # Batch tiles are independent -> "parallel" lets v7x spread grid
            # steps across its two TensorCores; harmless on v5e/v6e.
            dimension_semantics=("parallel",),
        ),
    )(x2d, w1, b1, w2, b2, wl, bl)


# ----------------------------------------------------------------------------
# Parameter initialization (deterministic, PyTorch-Linear-style uniform)
# ----------------------------------------------------------------------------
def init_linear_params(key, fan_in, fan_out):
    kw, kb = jax.random.split(key)
    bound = 1.0 / jnp.sqrt(jnp.float32(fan_in))
    # Stored as (in, out); equivalent to PyTorch's (out, in) weight transposed.
    w = jax.random.uniform(kw, (fan_in, fan_out), jnp.float32, -bound, bound)
    b = jax.random.uniform(kb, (fan_out,), jnp.float32, -bound, bound)
    return w, b


def init_net_params(key, inputsize, taskcla, weight_dtype=jnp.bfloat16):
    """weight_dtype: jnp.bfloat16 (default, fast on v6e/v7x MXU + halves the
    weight DMA) or jnp.float32 (strict PyTorch parity / v5e)."""
    ncha, size, _ = inputsize
    in_dim = ncha * size * size
    in_pad = _round_up(in_dim, 128)
    hidden = _HIDDEN

    keys = jax.random.split(key, 2 + len(taskcla))
    w1, b1 = init_linear_params(keys[0], in_dim, hidden)
    w2, b2 = init_linear_params(keys[1], hidden, hidden)
    heads = [
        init_linear_params(keys[2 + idx], hidden, n)
        for idx, (_, n) in enumerate(taskcla)
    ]

    # Zero-pad fc1 input rows: padded input columns are zero, so exact.
    w1 = jnp.pad(w1, ((0, in_pad - in_dim), (0, 0)))

    # Concatenate all heads into one lane-dense (hidden, OUT_pad) matrix.
    out_total = sum(n for _, n in taskcla)
    out_pad = _round_up(max(out_total, 1), 128)
    wl = jnp.concatenate([w for w, _ in heads], axis=1)
    bl = jnp.concatenate([b for _, b in heads], axis=0)
    wl = jnp.pad(wl, ((0, 0), (0, out_pad - out_total)))
    bl = jnp.pad(bl, (0, out_pad - out_total))

    return {
        "in_dim": in_dim,
        "in_pad": in_pad,
        "hidden": hidden,
        "out_total": out_total,
        "out_pad": out_pad,
        # Matmul operands in weight_dtype; biases stay f32 for the f32 tail.
        "w1": w1.astype(weight_dtype),
        "b1": b1.reshape(1, hidden),
        "w2": w2.astype(weight_dtype),
        "b2": b2.reshape(1, hidden),
        "wl": wl.astype(weight_dtype),
        "bl": bl.reshape(1, out_pad),
    }


# ----------------------------------------------------------------------------
# Forward pass (mirrors Net.forward, eval semantics)
# ----------------------------------------------------------------------------
def net_forward(params, x, taskcla, return_h=True):
    # h = x.view(B, -1)
    B = x.shape[0]
    h = x.reshape(B, -1)
    in_dim = h.shape[1]
    assert in_dim == params["in_dim"]

    # Batch tile: multiple of 8 sublanes, capped at _TB_MAX rows.
    tb = min(_TB_MAX, _round_up(max(B, 1), 8))
    B_pad = _round_up(max(B, 1), tb)

    # Pad batch (sublanes) and input features (lanes) with zeros only when
    # actually needed; padded rows/cols are sliced off below.
    if B_pad != B or params["in_pad"] != in_dim:
        h = jnp.pad(h, ((0, B_pad - B), (0, params["in_pad"] - in_dim)))

    out = fused_forward(
        h,
        params["w1"], params["b1"],
        params["w2"], params["b2"],
        params["wl"], params["bl"],
        tb=tb, return_h=return_h,
    )
    if return_h:
        h_pad, y_pad = out
    else:
        h_pad, y_pad = None, out

    y = []
    off = 0
    for _i, n in taskcla:
        y.append(y_pad[:B, off:off + n])
        off += n

    if return_h:
        return y, h_pad[:B]
    return y


# ----------------------------------------------------------------------------
# Main
# ----------------------------------------------------------------------------
if __name__ == "__main__":
    # Small shapes consistent with the module: ncha=1, size=16 -> in_dim=256.
    inputsize = (1, 16, 16)
    taskcla = [(0, 8), (1, 8)]
    batch = 2

    key = jax.random.PRNGKey(0)
    kparams, kx = jax.random.split(key)

    # Default bf16 weights (fast path on v6e/v7x); pass
    # weight_dtype=jnp.float32 for strict f32 PyTorch parity.
    params = init_net_params(kparams, inputsize, taskcla)
    # Input layout matches PyTorch NCHW: (B, ncha, size, size).
    x = jax.random.normal(kx, (batch,) + inputsize, dtype=jnp.float32)

    y, h = net_forward(params, x, taskcla, return_h=True)
    jax.block_until_ready(h)
    for yi in y:
        jax.block_until_ready(yi)

    # Also exercise the logits-only fast path (no h writeback).
    y_only = net_forward(params, x, taskcla, return_h=False)
    for yi in y_only:
        jax.block_until_ready(yi)

    # Sanity-check shapes and consistency between the two paths.
    assert h.shape == (batch, 256)
    assert all(yi.shape == (batch, n) for yi, (_, n) in zip(y, taskcla))
    assert all(jnp.all(jnp.isfinite(yi)) for yi in y)
    assert all(
        jnp.allclose(a, b, atol=1e-5, rtol=1e-5)
        for a, b in zip(y, y_only)
    )

    print("KERNEL_OK")
</pallas_src>

<mosaic_0001>
module attributes {stable_mosaic.version = 11 : i64} {
  func.func @_fused_mlp_kernel_hy(%arg0: i32, %arg1: memref<8x256xf32, #tpu.memory_space<vmem>>, %arg2: memref<256x256xbf16, #tpu.memory_space<vmem>>, %arg3: memref<1x256xf32, #tpu.memory_space<vmem>>, %arg4: memref<256x256xbf16, #tpu.memory_space<vmem>>, %arg5: memref<1x256xf32, #tpu.memory_space<vmem>>, %arg6: memref<256x128xbf16, #tpu.memory_space<vmem>>, %arg7: memref<1x128xf32, #tpu.memory_space<vmem>>, %arg8: memref<8x256xf32, #tpu.memory_space<vmem>>, %arg9: memref<8x128xf32, #tpu.memory_space<vmem>>) attributes {dimension_semantics = [#tpu.dimension_semantics<parallel>], iteration_bounds = array<i64: 1>, scalar_prefetch = 0 : i64, scratch_operands = 0 : i64, tpu.core_type = #tpu.core_type<tc>, window_params = [{transform_indices = @transform_0, window_bounds = array<i64: 8, 256>}, {pipeline_mode = #tpu.pipeline_mode<synchronous>, transform_indices = @transform_1, window_bounds = array<i64: 256, 256>}, {pipeline_mode = #tpu.pipeline_mode<synchronous>, transform_indices = @transform_2, window_bounds = array<i64: 1, 256>}, {pipeline_mode = #tpu.pipeline_mode<synchronous>, transform_indices = @transform_3, window_bounds = array<i64: 256, 256>}, {pipeline_mode = #tpu.pipeline_mode<synchronous>, transform_indices = @transform_4, window_bounds = array<i64: 1, 256>}, {pipeline_mode = #tpu.pipeline_mode<synchronous>, transform_indices = @transform_5, window_bounds = array<i64: 256, 128>}, {pipeline_mode = #tpu.pipeline_mode<synchronous>, transform_indices = @transform_6, window_bounds = array<i64: 1, 128>}, {transform_indices = @transform_7, window_bounds = array<i64: 8, 256>}, {transform_indices = @transform_8, window_bounds = array<i64: 8, 128>}]} {
    %c0 = arith.constant 0 : index
    %c0_0 = arith.constant 0 : index
    %0 = vector.load %arg1[%c0, %c0_0] : memref<8x256xf32, #tpu.memory_space<vmem>>, vector<8x256xf32>
    %1 = arith.truncf %0 : vector<8x256xf32> to vector<8x256xbf16>
    %c0_1 = arith.constant 0 : index
    %c0_2 = arith.constant 0 : index
    %2 = vector.load %arg2[%c0_1, %c0_2] : memref<256x256xbf16, #tpu.memory_space<vmem>>, vector<256x256xbf16>
    %cst = arith.constant dense<0.000000e+00> : vector<8x256xf32>
    %3 = tpu.matmul %1, %2, %cst {dimension_numbers = #tpu.dot_dimension_numbers<[1], [0], [0], [1], [0, 0, 1, 1], [], []>} : vector<8x256xbf16>, vector<256x256xbf16>, vector<8x256xf32> -> vector<8x256xf32>
    %c0_3 = arith.constant 0 : index
    %c0_4 = arith.constant 0 : index
    %4 = vector.load %arg3[%c0_3, %c0_4] : memref<1x256xf32, #tpu.memory_space<vmem>>, vector<1x256xf32>
    %5 = vector.broadcast %4 : vector<1x256xf32> to vector<8x256xf32>
    %6 = arith.addf %3, %5 : vector<8x256xf32>
    %cst_5 = arith.constant 0.000000e+00 : f32
    %7 = vector.broadcast %cst_5 : f32 to vector<8x256xf32>
    %8 = arith.maximumf %6, %7 : vector<8x256xf32>
    %9 = arith.truncf %8 : vector<8x256xf32> to vector<8x256xbf16>
    %c0_6 = arith.constant 0 : index
    %c0_7 = arith.constant 0 : index
    %10 = vector.load %arg4[%c0_6, %c0_7] : memref<256x256xbf16, #tpu.memory_space<vmem>>, vector<256x256xbf16>
    %cst_8 = arith.constant dense<0.000000e+00> : vector<8x256xf32>
    %11 = tpu.matmul %9, %10, %cst_8 {dimension_numbers = #tpu.dot_dimension_numbers<[1], [0], [0], [1], [0, 0, 1, 1], [], []>} : vector<8x256xbf16>, vector<256x256xbf16>, vector<8x256xf32> -> vector<8x256xf32>
    %c0_9 = arith.constant 0 : index
    %c0_10 = arith.constant 0 : index
    %12 = vector.load %arg5[%c0_9, %c0_10] : memref<1x256xf32, #tpu.memory_space<vmem>>, vector<1x256xf32>
    %13 = vector.broadcast %12 : vector<1x256xf32> to vector<8x256xf32>
    %14 = arith.addf %11, %13 : vector<8x256xf32>
    %cst_11 = arith.constant 0.000000e+00 : f32
    %15 = vector.broadcast %cst_11 : f32 to vector<8x256xf32>
    %16 = arith.maximumf %14, %15 : vector<8x256xf32>
    %17 = arith.truncf %16 : vector<8x256xf32> to vector<8x256xbf16>
    %c0_12 = arith.constant 0 : index
    %c0_13 = arith.constant 0 : index
    %18 = vector.load %arg6[%c0_12, %c0_13] : memref<256x128xbf16, #tpu.memory_space<vmem>>, vector<256x128xbf16>
    %cst_14 = arith.constant dense<0.000000e+00> : vector<8x128xf32>
    %19 = tpu.matmul %17, %18, %cst_14 {dimension_numbers = #tpu.dot_dimension_numbers<[1], [0], [0], [1], [0, 0, 1, 1], [], []>} : vector<8x256xbf16>, vector<256x128xbf16>, vector<8x128xf32> -> vector<8x128xf32>
    %c0_15 = arith.constant 0 : index
    %c0_16 = arith.constant 0 : index
    %20 = vector.load %arg7[%c0_15, %c0_16] : memref<1x128xf32, #tpu.memory_space<vmem>>, vector<1x128xf32>
    %21 = vector.broadcast %20 : vector<1x128xf32> to vector<8x128xf32>
    %22 = arith.addf %19, %21 : vector<8x128xf32>
    %c0_17 = arith.constant 0 : index
    %c0_18 = arith.constant 0 : index
    %23 = vector.load %arg8[%c0_17, %c0_18] : memref<8x256xf32, #tpu.memory_space<vmem>>, vector<8x256xf32>
    tpu.vector_store %arg8[%c0_17, %c0_18], %16 {strides = array<i32>} : memref<8x256xf32, #tpu.memory_space<vmem>>, vector<8x256xf32>,
    %c0_19 = arith.constant 0 : index
    %c0_20 = arith.constant 0 : index
    %24 = vector.load %arg9[%c0_19, %c0_20] : memref<8x128xf32, #tpu.memory_space<vmem>>, vector<8x128xf32>
    tpu.vector_store %arg9[%c0_19, %c0_20], %22 {strides = array<i32>} : memref<8x128xf32, #tpu.memory_space<vmem>>, vector<8x128xf32>,
    return
  }
  func.func @transform_0(%arg0: i32) -> (i32, i32) {
    %c0_i32 = arith.constant 0 : i32
    %c0_i32_0 = arith.constant 0 : i32
    return %arg0, %c0_i32 : i32, i32
  }
  func.func @transform_1(%arg0: i32) -> (i32, i32) {
    %c0_i32 = arith.constant 0 : i32
    %c0_i32_0 = arith.constant 0 : i32
    %c0_i32_1 = arith.constant 0 : i32
    return %c0_i32, %c0_i32_0 : i32, i32
  }
  func.func @transform_2(%arg0: i32) -> (i32, i32) {
    %c0_i32 = arith.constant 0 : i32
    %c0_i32_0 = arith.constant 0 : i32
    %c0_i32_1 = arith.constant 0 : i32
    return %c0_i32, %c0_i32_0 : i32, i32
  }
  func.func @transform_3(%arg0: i32) -> (i32, i32) {
    %c0_i32 = arith.constant 0 : i32
    %c0_i32_0 = arith.constant 0 : i32
    %c0_i32_1 = arith.constant 0 : i32
    return %c0_i32, %c0_i32_0 : i32, i32
  }
  func.func @transform_4(%arg0: i32) -> (i32, i32) {
    %c0_i32 = arith.constant 0 : i32
    %c0_i32_0 = arith.constant 0 : i32
    %c0_i32_1 = arith.constant 0 : i32
    return %c0_i32, %c0_i32_0 : i32, i32
  }
  func.func @transform_5(%arg0: i32) -> (i32, i32) {
    %c0_i32 = arith.constant 0 : i32
    %c0_i32_0 = arith.constant 0 : i32
    %c0_i32_1 = arith.constant 0 : i32
    return %c0_i32, %c0_i32_0 : i32, i32
  }
  func.func @transform_6(%arg0: i32) -> (i32, i32) {
    %c0_i32 = arith.constant 0 : i32
    %c0_i32_0 = arith.constant 0 : i32
    %c0_i32_1 = arith.constant 0 : i32
    return %c0_i32, %c0_i32_0 : i32, i32
  }
  func.func @transform_7(%arg0: i32) -> (i32, i32) {
    %c0_i32 = arith.constant 0 : i32
    %c0_i32_0 = arith.constant 0 : i32
    return %arg0, %c0_i32 : i32, i32
  }
  func.func @transform_8(%arg0: i32) -> (i32, i32) {
    %c0_i32 = arith.constant 0 : i32
    %c0_i32_0 = arith.constant 0 : i32
    return %arg0, %c0_i32 : i32, i32
  }
}

</mosaic_0001>

<bundles_post_ra>
// kernel: tpu_custom_call.1
= control target key start
LH: loop header
LB: loop body
LE: loop exit
PB: predicated region body
PF: predicated region fallthrough
CT: control target
= control target key end

     0   :  { %14 = vsyncpa [#allocation3], 0  ;;  %s1304_s0 = inlined_call_operand.hbm [shape: f32[8,256], index: 0, kind: input, shape index: {}]   ;;  %s1305_s1 = inlined_call_operand.hbm [shape: bf16[256,256], index: 1, kind: input, shape index: {}]   ;;  %s1306_s2 = inlined_call_operand.vmem [shape: f32[1,256], index: 2, kind: input, shape index: {}]   ;;  %s1307_s3 = inlined_call_operand.hbm [shape: bf16[256,256], index: 3, kind: input, shape index: {}]   ;;  %s1308_s4 = inlined_call_operand.vmem [shape: f32[1,256], index: 4, kind: input, shape index: {}]   ;;  %s1309_s5 = inlined_call_operand.hbm [shape: bf16[256,128], index: 5, kind: input, shape index: {}]   ;;  %s1310_s6 = inlined_call_operand.vmem [shape: f32[1,128], index: 6, kind: input, shape index: {}]   ;;  %s1311_s7 = inlined_call_operand.hbm [shape: f32[8,256], index: 7, kind: output, shape index: {0}]   ;;  %s1312_s8 = inlined_call_operand.hbm [shape: f32[8,128], index: 8, kind: output, shape index: {1}]  }
   0x1   :  { %15 = vsyncpa [#allocation6], 0 }
   0x2   :  { %16 = vsyncpa [#allocation9], 0 }
   0x3   :  { %17 = vsyncpa [#allocation4], 0 }
   0x4   :  { %18 = vsyncpa [#allocation12], 0  ;;  %s1162_s27 = smov [#allocation5]   ;;  %s1020_s9 = scalar_lea.hbm %s1305_s1, 4096 }
   0x5   :  { %s34_s28 = sshll.u32 %s1162_s27, 4  ;;  %p1021_p0 = scmp.ne.s32.totalorder %s1305_s1, %s1020_s9  ;;  %s35_s28 = int_to_ptr.vmem [resolvable:$true] %s34_s28 }
   0x6   :  { %p1024_p1 = scmp.lt.u32.totalorder %s1020_s9, %s1305_s1 }
   0x8   :  { %p1026_p2 = pnand %p1024_p1, %p1021_p0 }
   0xa   :  { %1029 = shalt.err (!%p1026_p2)
}
   0xb   :  { %s1030_s14 = scalar_lea.vmem %s35_s28, 4096  ;;  %p1035_p4 = scmp.lt.s32.totalorder %s35_s28, %s35_s28 }
   0xc   :  { %p1031_p3 = scmp.ne.s32.totalorder %s35_s28, %s1030_s14  ;;  %p1036_p5 = scmp.lt.s32.totalorder %s1030_s14, %s1030_s14 }
   0xe   :  { %p1037_p6 = por %p1036_p5, %p1035_p4 }
  0x10   :  { %p1038_p7 = pnand %p1037_p6, %p1031_p3 }
  0x12   :  { %1041 = shalt.err (!%p1038_p7)
}
  0x13   :  { %s1163_s15 = smov 128   ;;  %s1164_s16 = smov 8  }
  0x14   :  { %40 = dma.hbm_to_vmem [thread:$0]  %s1305_s1, 4096, %s35_s28, [#allocation6], %s1163_s15, %s1163_s15, %s1164_s16  }
  0x15   :  { %s1165_s19 = smov [#allocation2]   ;;  %s1166_s21 = smov [#allocation7]  }
  0x16   :  { %s25_s20 = sshll.u32 %s1165_s19, 4  ;;  %s48_s22 = sshll.u32 %s1166_s21, 4  ;;  %s26_s20 = int_to_ptr.vmem [resolvable:$true] %s25_s20  ;;  %s49_s22 = int_to_ptr.vmem [resolvable:$true] %s48_s22 }
  0x17   :  { %s1042_s25 = scalar_lea.hbm %s1304_s0, 256 }
  0x18   :  { %p1043_p8 = scmp.ne.s32.totalorder %s1304_s0, %s1042_s25  ;;  %p1046_p9 = scmp.lt.u32.totalorder %s1042_s25, %s1304_s0 }
  0x1a   :  { %p1048_p10 = pnand %p1046_p9, %p1043_p8 }
  0x1c   :  { %1051 = shalt.err (!%p1048_p10)
}
  0x1d   :  { %s1052_s1 = scalar_lea.vmem %s26_s20, 256  ;;  %p1057_p12 = scmp.lt.s32.totalorder %s26_s20, %s26_s20 }
  0x1e   :  { %p1053_p11 = scmp.ne.s32.totalorder %s26_s20, %s1052_s1  ;;  %p1058_p13 = scmp.lt.s32.totalorder %s1052_s1, %s1052_s1 }
  0x20   :  { %p1059_p0 = por %p1058_p13, %p1057_p12 }
  0x22   :  { %p1060_p1 = pnand %p1059_p0, %p1053_p11 }
  0x24   :  { %1063 = shalt.err (!%p1060_p1)
}
  0x25   :  { %28 = dma.hbm_to_vmem [thread:$0]  %s1304_s0, 256, %s26_s20, [#allocation3]  }
  0x26   :  { %s1064_s12 = scalar_lea.hbm %s1307_s3, 4096 }
  0x27   :  { %p1065_p2 = scmp.ne.s32.totalorder %s1307_s3, %s1064_s12  ;;  %p1068_p3 = scmp.lt.u32.totalorder %s1064_s12, %s1307_s3 }
  0x29   :  { %p1070_p4 = pnand %p1068_p3, %p1065_p2 }
  0x2b   :  { %1073 = shalt.err (!%p1070_p4)
}
  0x2c   :  { %s1074_s19 = scalar_lea.vmem %s49_s22, 4096  ;;  %p1079_p6 = scmp.lt.s32.totalorder %s49_s22, %s49_s22 }
  0x2d   :  { %p1075_p5 = scmp.ne.s32.totalorder %s49_s22, %s1074_s19  ;;  %p1080_p7 = scmp.lt.s32.totalorder %s1074_s19, %s1074_s19 }
  0x2f   :  { %p1081_p8 = por %p1080_p7, %p1079_p6 }
  0x31   :  { %p1082_p9 = pnand %p1081_p8, %p1075_p5 }
  0x33   :  { %1085 = shalt.err (!%p1082_p9)
}
  0x34   :  { %54 = dma.hbm_to_vmem [thread:$0]  %s1307_s3, 4096, %s49_s22, [#allocation6], %s1163_s15, %s1163_s15, %s1164_s16  }
  0x35   :  { %s1167_s21 = smov [#allocation8]   ;;  %s1086_s26 = scalar_lea.hbm %s1309_s5, 2048 }
  0x36   :  { %s62_s23 = sshll.u32 %s1167_s21, 4  ;;  %p1087_p10 = scmp.ne.s32.totalorder %s1309_s5, %s1086_s26  ;;  %s63_s23 = int_to_ptr.vmem [resolvable:$true] %s62_s23 }
  0x37   :  { %p1090_p11 = scmp.lt.u32.totalorder %s1086_s26, %s1309_s5 }
  0x39   :  { %p1092_p12 = pnand %p1090_p11, %p1087_p10 }
  0x3b   :  { %1095 = shalt.err (!%p1092_p12)
}
  0x3c   :  { %s1096_s28 = scalar_lea.vmem %s63_s23, 2048  ;;  %p1101_p0 = scmp.lt.s32.totalorder %s63_s23, %s63_s23 }
  0x3d   :  { %p1097_p13 = scmp.ne.s32.totalorder %s63_s23, %s1096_s28  ;;  %p1102_p1 = scmp.lt.s32.totalorder %s1096_s28, %s1096_s28 }
  0x3f   :  { %p1103_p2 = por %p1102_p1, %p1101_p0 }
  0x41   :  { %p1104_p3 = pnand %p1103_p2, %p1097_p13 }
  0x43   :  { %1107 = shalt.err (!%p1104_p3)
}
  0x44   :  { %s1168_s3 = smov 64   ;;  %s1169_s15 = smov 4  }
  0x45   :  { %68 = dma.hbm_to_vmem [thread:$0]  %s1309_s5, 2048, %s63_s23, [#allocation9], %s1168_s3, %s1168_s3, %s1169_s15  }
  0x46   :  { %1152 = dma.done.wait [#allocation3], 256  }
  0x47   :  { %1153 = vsyncadd [#allocation3], 4294967040 }
  0x48   :  { %1154 = dma.done.wait [#allocation6], 8192  }
  0x49   :  { %1155 = vsyncadd [#allocation6], 4294959104 }
  0x4a   :  { %1156 = dma.done.wait [#allocation9], 2048  }
  0x4b   :  { %1157 = vsyncadd [#allocation9], 4294965248  ;;  %v908_v0 = vld [vmem:[#allocation5 + $0x4] ss:$8 sps:$4 sm:$0xff]   ;;  %v910_v1 = vld [vmem:[#allocation5] ss:$8 sps:$4 sm:$0xff]  }
  0x4c   :  { %292 = vmatprep.subr.bf16.mxu0 %v908_v0  ;;  %v911_v2 = vld [vmem:[#allocation5 + $0x14] ss:$8 sps:$4 sm:$0xff]   ;;  %v913_v3 = vld [vmem:[#allocation5 + $0x10] ss:$8 sps:$4 sm:$0xff]   ;;  %v914_v4 = vld [vmem:[#allocation5 + $0x24] ss:$8 sps:$4 sm:$0xff]  }
  0x4d   :  { %293 = vmatpush1.bf16.msra.mxu0 %v910_v1  ;;  %v916_v5 = vld [vmem:[#allocation5 + $0x20] ss:$8 sps:$4 sm:$0xff]   ;;  %v917_v6 = vld [vmem:[#allocation5 + $0x34] ss:$8 sps:$4 sm:$0xff]   ;;  %v919_v7 = vld [vmem:[#allocation5 + $0x30] ss:$8 sps:$4 sm:$0xff]  }
  0x4e   :  { %294 = vmatprep.subr.bf16.mxu0 %v911_v2  ;;  %v920_v8 = vld [vmem:[#allocation5 + $0x44] ss:$8 sps:$4 sm:$0xff]   ;;  %v922_v9 = vld [vmem:[#allocation5 + $0x40] ss:$8 sps:$4 sm:$0xff]   ;;  %v923_v10 = vld [vmem:[#allocation5 + $0x54] ss:$8 sps:$4 sm:$0xff]  }
  0x4f   :  { %v925_v11 = vld [vmem:[#allocation5 + $0x50] ss:$8 sps:$4 sm:$0xff]   ;;  %v926_v12 = vld [vmem:[#allocation5 + $0x64] ss:$8 sps:$4 sm:$0xff]   ;;  %v928_v13 = vld [vmem:[#allocation5 + $0x60] ss:$8 sps:$4 sm:$0xff]  }
  0x50   :  { %v85_v14 = vld [vmem:[#allocation2 + $0x8] sm:$0xff]  ;;  %v956_v16 = vld [vmem:[#allocation7 + $0x4] ss:$8 sps:$4 sm:$0xff]   ;;  %v958_v17 = vld [vmem:[#allocation7] ss:$8 sps:$4 sm:$0xff]   ;;  %s1170_s11 = smov [#allocation10]  }
  0x51   :  { %295 = vmatpush1.bf16.msra.mxu0 %v913_v3  ;;  %v87_v15 = vpack.c.bf16 %v85_v14, %v85_v14  ;;  %v929_v18 = vld [vmem:[#allocation5 + $0x74] ss:$8 sps:$4 sm:$0xff]   ;;  %v931_v20 = vld [vmem:[#allocation5 + $0x70] ss:$8 sps:$4 sm:$0xff]   ;;  %541 = vmatprep.subr.bf16.mxu1 %v956_v16  ;;  %v962_v22 = vld [vmem:[#allocation7 + $0x24] ss:$8 sps:$4 sm:$0xff]   ;;  %v122_v16 = vlaneseq }
  0x52   :  { %296 = vmatprep.subr.bf16.mxu0 %v914_v4  ;;  %v959_v19 = vld [vmem:[#allocation7 + $0x14] ss:$8 sps:$4 sm:$0xff]   ;;  %542 = vmatpush1.bf16.msra.mxu1 %v958_v17  ;;  %v961_v21 = vld [vmem:[#allocation7 + $0x10] ss:$8 sps:$4 sm:$0xff]   ;;  %v932_v23 = vld [vmem:[#allocation5 + $0x84] ss:$8 sps:$4 sm:$0xff]  }
  0x53   :  { %324 = vmatprep.mubr.bf16.mxu0 %v87_v15  ;;  %543 = vmatprep.subr.bf16.mxu1 %v959_v19  ;;  %v934_v24 = vld [vmem:[#allocation5 + $0x80] ss:$8 sps:$4 sm:$0xff]   ;;  %v965_v26 = vld [vmem:[#allocation7 + $0x34] ss:$8 sps:$4 sm:$0xff]   ;;  %v937_v28 = vld [vmem:[#allocation5 + $0x90] ss:$8 sps:$4 sm:$0xff]  }
  0x54   :  { %v964_v25 = vld [vmem:[#allocation7 + $0x20] ss:$8 sps:$4 sm:$0xff]   ;;  %v935_v27 = vld [vmem:[#allocation5 + $0x94] ss:$8 sps:$4 sm:$0xff]   ;;  %v967_v29 = vld [vmem:[#allocation7 + $0x30] ss:$8 sps:$4 sm:$0xff]  }
  0x55   :  { %297 = vmatpush1.bf16.msra.mxu0 %v916_v5  ;;  %v968_v30 = vld [vmem:[#allocation7 + $0x44] ss:$8 sps:$4 sm:$0xff]   ;;  %v940_v32 = vld [vmem:[#allocation5 + $0xa0] ss:$8 sps:$4 sm:$0xff]   ;;  %v971_v34 = vld [vmem:[#allocation7 + $0x54] ss:$8 sps:$4 sm:$0xff]  }
  0x56   :  { %298 = vmatprep.subr.bf16.mxu0 %v917_v6  ;;  %544 = vmatpush1.bf16.msra.mxu1 %v961_v21  ;;  %v938_v31 = vld [vmem:[#allocation5 + $0xa4] ss:$8 sps:$4 sm:$0xff]   ;;  %v970_v33 = vld [vmem:[#allocation7 + $0x40] ss:$8 sps:$4 sm:$0xff]   ;;  %v941_v35 = vld [vmem:[#allocation5 + $0xb4] ss:$8 sps:$4 sm:$0xff]  }
  0x57   :  { %545 = vmatprep.subr.bf16.mxu1 %v962_v22  ;;  %v973_v36 = vld [vmem:[#allocation7 + $0x50] ss:$8 sps:$4 sm:$0xff]   ;;  %v974_v38 = vld [vmem:[#allocation7 + $0x64] ss:$8 sps:$4 sm:$0xff]   ;;  %v976_v40 = vld [vmem:[#allocation7 + $0x60] ss:$8 sps:$4 sm:$0xff]  }
  0x58   :  { %v943_v37 = vld [vmem:[#allocation5 + $0xb0] ss:$8 sps:$4 sm:$0xff]   ;;  %v944_v39 = vld [vmem:[#allocation5 + $0xc4] ss:$8 sps:$4 sm:$0xff]   ;;  %v946_v41 = vld [vmem:[#allocation5 + $0xc0] ss:$8 sps:$4 sm:$0xff]  }
  0x59   :  { %299 = vmatpush1.bf16.msra.mxu0 %v919_v7  ;;  %v977_v42 = vld [vmem:[#allocation7 + $0x74] ss:$8 sps:$4 sm:$0xff]   ;;  %v979_v44 = vld [vmem:[#allocation7 + $0x70] ss:$8 sps:$4 sm:$0xff]   ;;  %v980_v46 = vld [vmem:[#allocation7 + $0x84] ss:$8 sps:$4 sm:$0xff]  }
  0x5a   :  { %300 = vmatprep.subr.bf16.mxu0 %v920_v8  ;;  %546 = vmatpush1.bf16.msra.mxu1 %v964_v25  ;;  %v947_v43 = vld [vmem:[#allocation5 + $0xd4] ss:$8 sps:$4 sm:$0xff]   ;;  %v949_v45 = vld [vmem:[#allocation5 + $0xd0] ss:$8 sps:$4 sm:$0xff]   ;;  %v950_v47 = vld [vmem:[#allocation5 + $0xe4] ss:$8 sps:$4 sm:$0xff]  }
  0x5b   :  { %547 = vmatprep.subr.bf16.mxu1 %v965_v26  ;;  %v982_v48 = vld [vmem:[#allocation7 + $0x80] ss:$8 sps:$4 sm:$0xff]   ;;  %v983_v50 = vld [vmem:[#allocation7 + $0x94] ss:$8 sps:$4 sm:$0xff]   ;;  %v985_v52 = vld [vmem:[#allocation7 + $0x90] ss:$8 sps:$4 sm:$0xff]  }
  0x5c   :  { %v952_v49 = vld [vmem:[#allocation5 + $0xe0] ss:$8 sps:$4 sm:$0xff]   ;;  %v953_v51 = vld [vmem:[#allocation5 + $0xf4] ss:$8 sps:$4 sm:$0xff]   ;;  %v955_v53 = vld [vmem:[#allocation5 + $0xf0] ss:$8 sps:$4 sm:$0xff]  }
  0x5d   :  { %301 = vmatpush1.bf16.msra.mxu0 %v922_v9  ;;  %v84_v54 = vld [vmem:[#allocation2] sm:$0xff]  ;;  %v986_v55 = vld [vmem:[#allocation7 + $0xa4] ss:$8 sps:$4 sm:$0xff]   ;;  %v988_v57 = vld [vmem:[#allocation7 + $0xa0] ss:$8 sps:$4 sm:$0xff]   ;;  %v123_v17 = vshrl.u32 %v122_v16, 7 }
  0x5e   :  { %302 = vmatprep.subr.bf16.mxu0 %v923_v10  ;;  %548 = vmatpush1.bf16.msra.mxu1 %v967_v29  ;;  %v86_v56 = vpack.c.bf16 %v84_v54, %v84_v54  ;;  %v989_v58 = vld [vmem:[#allocation7 + $0xb4] ss:$8 sps:$4 sm:$0xff]   ;;  %v991_v59 = vld [vmem:[#allocation7 + $0xb0] ss:$8 sps:$4 sm:$0xff]   ;;  %v992_v60 = vld [vmem:[#allocation7 + $0xc4] ss:$8 sps:$4 sm:$0xff]  }
  0x5f   :  { %549 = vmatprep.subr.bf16.mxu1 %v968_v30  ;;  %v994_v61 = vld [vmem:[#allocation7 + $0xc0] ss:$8 sps:$4 sm:$0xff]   ;;  %v995_v62 = vld [vmem:[#allocation7 + $0xd4] ss:$8 sps:$4 sm:$0xff]   ;;  %v997_v63 = vld [vmem:[#allocation7 + $0xd0] ss:$8 sps:$4 sm:$0xff]  }
  0x60   :  { %v998_v0 = vld [vmem:[#allocation7 + $0xe4] ss:$8 sps:$4 sm:$0xff]   ;;  %v1000_v1 = vld [vmem:[#allocation7 + $0xe0] ss:$8 sps:$4 sm:$0xff]   ;;  %v1001_v2 = vld [vmem:[#allocation7 + $0xf4] ss:$8 sps:$4 sm:$0xff]  }
  0x61   :  { %303 = vmatpush1.bf16.msra.mxu0 %v925_v11  ;;  %v1003_v3 = vld [vmem:[#allocation7 + $0xf0] ss:$8 sps:$4 sm:$0xff]   ;;  %v1004_v4 = vld [vmem:[#allocation8 + $0x40] sm:$0xff]   ;;  %v1006_v6 = vld [vmem:[#allocation8 + $0x48] sm:$0xff]   ;;  %s770_s12 = sshll.u32 %s1170_s11, 4  ;;  %s771_s12 = int_to_ptr.vmem [resolvable:$true] %s770_s12 }
  0x62   :  { %304 = vmatprep.subr.bf16.mxu0 %v926_v12  ;;  %550 = vmatpush1.bf16.msra.mxu1 %v970_v33  ;;  %v1005_v5 = vld [vmem:[#allocation8] sm:$0xff]   ;;  %v1007_v7 = vld [vmem:[#allocation8 + $0x8] sm:$0xff]   ;;  %v1008_v8 = vld [vmem:[#allocation8 + $0x50] sm:$0xff]   ;;  %p1113_p5 = scmp.lt.s32.totalorder %s771_s12, %s771_s12 }
  0x63   :  { %551 = vmatprep.subr.bf16.mxu1 %v971_v34  ;;  %v1009_v9 = vld [vmem:[#allocation8 + $0x10] sm:$0xff]   ;;  %v1010_v10 = vld [vmem:[#allocation8 + $0x58] sm:$0xff]   ;;  %v1012_v12 = vld [vmem:[#allocation8 + $0x60] sm:$0xff]  }
  0x64   :  { %v1011_v11 = vld [vmem:[#allocation8 + $0x18] sm:$0xff]   ;;  %v1014_v14 = vld [vmem:[#allocation8 + $0x68] sm:$0xff]   ;;  %v120_v19 = vld [vmem:[%s1306_s2] sm:$0x3] }
  0x65   :  { %305 = vmatpush1.bf16.msra.mxu0 %v928_v13  ;;  %v1013_v13 = vld [vmem:[#allocation8 + $0x20] sm:$0xff]   ;;  %v1015_v15 = vld [vmem:[#allocation8 + $0x28] sm:$0xff]   ;;  %v1016_v33 = vld [vmem:[#allocation8 + $0x70] sm:$0xff]  }
  0x66   :  { %306 = vmatprep.subr.bf16.mxu0 %v929_v18  ;;  %552 = vmatpush1.bf16.msra.mxu1 %v973_v36  ;;  %v124_v18 = vsub.s32 0, %v123_v17  ;;  %v1017_v34 = vld [vmem:[#allocation8 + $0x30] sm:$0xff]   ;;  %v1019_v36 = vld [vmem:[#allocation8 + $0x38] sm:$0xff]  }
  0x67   :  { %553 = vmatprep.subr.bf16.mxu1 %v974_v38 }
  0x68   :  { %v125_v21 = vrot.slane %v120_v19, %v124_v18 }
  0x69   :  { %307 = vmatpush1.bf16.msra.mxu0 %v931_v20  ;;  %v128_v20 = vsub.s32 1, %v123_v17 }
  0x6a   :  { %308 = vmatprep.subr.bf16.mxu0 %v932_v23  ;;  %554 = vmatpush1.bf16.msra.mxu1 %v976_v40 }
  0x6b   :  { %555 = vmatprep.subr.bf16.mxu1 %v977_v42  ;;  %v129_v22 = vrot.slane %v120_v19, %v128_v20 }
  0x6d   :  { %309 = vmatpush1.bf16.msra.mxu0 %v934_v24 }
  0x6e   :  { %310 = vmatprep.subr.bf16.mxu0 %v935_v27  ;;  %556 = vmatpush1.bf16.msra.mxu1 %v979_v44 }
  0x6f   :  { %557 = vmatprep.subr.bf16.mxu1 %v980_v46 }
  0x71   :  { %311 = vmatpush1.bf16.msra.mxu0 %v937_v28 }
  0x72   :  { %312 = vmatprep.subr.bf16.mxu0 %v938_v31  ;;  %558 = vmatpush1.bf16.msra.mxu1 %v982_v48 }
  0x73   :  { %559 = vmatprep.subr.bf16.mxu1 %v983_v50 }
  0x75   :  { %313 = vmatpush1.bf16.msra.mxu0 %v940_v32 }
  0x76   :  { %314 = vmatprep.subr.bf16.mxu0 %v941_v35  ;;  %560 = vmatpush1.bf16.msra.mxu1 %v985_v52  ;;  %v1018_v35 = vld [vmem:[#allocation8 + $0x78] sm:$0xff]  }
  0x77   :  { %561 = vmatprep.subr.bf16.mxu1 %v986_v55 }
  0x79   :  { %315 = vmatpush1.bf16.msra.mxu0 %v943_v37  ;;  %v369_v37 = vld [vmem:[%s1308_s4] sm:$0x3]  ;;  %s1108_s4 = scalar_lea.vmem %s771_s12, 256 }
  0x7a   :  { %316 = vmatprep.subr.bf16.mxu0 %v944_v39  ;;  %562 = vmatpush1.bf16.msra.mxu1 %v988_v57  ;;  %v374_v38 = vrot.slane %v369_v37, %v124_v18  ;;  %v378_v39 = vrot.slane %v369_v37, %v128_v20  ;;  %p1109_p4 = scmp.ne.s32.totalorder %s771_s12, %s1108_s4  ;;  %p1114_p6 = scmp.lt.s32.totalorder %s1108_s4, %s1108_s4 }
  0x7b   :  { %563 = vmatprep.subr.bf16.mxu1 %v989_v58 }
  0x7c   :  { %p1115_p7 = por %p1114_p6, %p1113_p5 }
  0x7d   :  { %317 = vmatpush1.bf16.msra.mxu0 %v946_v41 }
  0x7e   :  { %318 = vmatprep.subr.bf16.mxu0 %v947_v43  ;;  %564 = vmatpush1.bf16.msra.mxu1 %v991_v59  ;;  %p1116_p8 = pnand %p1115_p7, %p1109_p4 }
  0x7f   :  { %565 = vmatprep.subr.bf16.mxu1 %v992_v60 }
  0x81   :  { %319 = vmatpush1.bf16.msra.mxu0 %v949_v45 }
  0x82   :  { %320 = vmatprep.subr.bf16.mxu0 %v950_v47  ;;  %566 = vmatpush1.bf16.msra.mxu1 %v994_v61 }
  0x83   :  { %567 = vmatprep.subr.bf16.mxu1 %v995_v62 }
  0x85   :  { %321 = vmatpush1.bf16.msra.mxu0 %v952_v49 }
  0x86   :  { %322 = vmatprep.subr.bf16.mxu0 %v953_v51  ;;  %568 = vmatpush1.bf16.msra.mxu1 %v997_v63 }
  0x87   :  { %569 = vmatprep.subr.bf16.mxu1 %v998_v0 }
  0x89   :  { %323 = vmatpush1.bf16.msra.mxu0 %v955_v53 }
  0x8a   :  { %570 = vmatpush1.bf16.msra.mxu1 %v1000_v1  ;;  %876 = vmatprep.subr.bf16.mxu0 %v1004_v4 }
  0x8b   :  { %571 = vmatprep.subr.bf16.mxu1 %v1001_v2 }
  0x8c   :  { %325 = vmatmul.mubr.bf16.vlgmr.msra.gmra.mrb[0].mxu0 %v86_v56 }
  0x8d   :  { %877 = vmatpush3.bf16.msra.mxu0 %v1005_v5 }
  0x8e   :  { %572 = vmatpush1.bf16.msra.mxu1 %v1003_v3  ;;  %878 = vmatprep.subr.bf16.mxu0 %v1006_v6 }
  0x91   :  { %879 = vmatpush3.bf16.msra.mxu0 %v1007_v7 }
  0x92   :  { %880 = vmatprep.subr.bf16.mxu0 %v1008_v8 }
  0x95   :  { %881 = vmatpush3.bf16.msra.mxu0 %v1009_v9 }
  0x96   :  { %882 = vmatprep.subr.bf16.mxu0 %v1010_v10 }
  0x99   :  { %883 = vmatpush3.bf16.msra.mxu0 %v1011_v11 }
  0x9a   :  { %884 = vmatprep.subr.bf16.mxu0 %v1012_v12 }
  0x9d   :  { %885 = vmatpush3.bf16.msra.mxu0 %v1013_v13 }
  0x9e   :  { %886 = vmatprep.subr.bf16.mxu0 %v1014_v14 }
  0xa1   :  { %887 = vmatpush3.bf16.msra.mxu0 %v1015_v15 }
  0xa2   :  { %888 = vmatprep.subr.bf16.mxu0 %v1016_v33 }
  0xa5   :  { %889 = vmatpush3.bf16.msra.mxu0 %v1017_v34 }
  0xa6   :  { %890 = vmatprep.subr.bf16.mxu0 %v1018_v35 }
  0xa9   :  { %891 = vmatpush3.bf16.msra.mxu0 %v1019_v36 }
 0x15f   :  { %v326_v23 = vpop.f32.mrb[0].mxu0 }
 0x160   :  { %v327_v24 = vadd.f32 %v326_v23, %v125_v21  ;;  %v328_v25 = vpop.f32.mrb[1].mxu0 }
 0x161   :  { %v329_v26 = vadd.f32 %v328_v25, %v129_v22  ;;  %v330_v27 = vpop.f32.mrb[2].mxu0 }
 0x162   :  { %v333_v28 = vmax.f32 %v327_v24, 0.0  ;;  %v331_v29 = vpop.f32.mrb[3].mxu0 }
 0x163   :  { %v334_v30 = vmax.f32 %v329_v26, 0.0 }
 0x164   :  { %v335_v32 = vpack.c.bf16 %v333_v28, %v333_v28 }
 0x165   :  { %v336_v31 = vpack.c.bf16 %v334_v30, %v334_v30 }
 0x167   :  { %573 = vmatprep.mubr.bf16.mxu1 %v336_v31 }
 0x168   :  { %574 = vmatmul.mubr.bf16.vlgmr.msra.gmra.mrb[0].mxu1 %v335_v32 }
 0x23b   :  { %v575_v40 = vpop.f32.mrb[0].mxu1 }
 0x23c   :  { %v576_v41 = vadd.f32 %v575_v40, %v374_v38  ;;  %v577_v42 = vpop.f32.mrb[1].mxu1 }
 0x23d   :  { %v578_v43 = vadd.f32 %v577_v42, %v378_v39  ;;  %v579_v44 = vpop.f32.mrb[2].mxu1 }
 0x23e   :  { %v582_v45 = vmax.f32 %v576_v41, 0.0  ;;  %v580_v46 = vpop.f32.mrb[3].mxu1 }
 0x23f   :  { %v583_v47 = vmax.f32 %v578_v43, 0.0 }
 0x240   :  { %761 = vst [vmem:[#allocation10] sm:$0xff] %v582_v45  ;;  %v584_v49 = vpack.c.bf16 %v582_v45, %v582_v45 }
 0x241   :  { %v585_v48 = vpack.c.bf16 %v583_v47, %v583_v47  ;;  %762 = vst [vmem:[#allocation10 + $0x8] sm:$0xff] %v583_v47 }
 0x243   :  { %753 = vmatprep.mubr.bf16.mxu0 %v585_v48 }
 0x244   :  { %754 = vmatmul.mubr.bf16.vlgmr.msra.gmra.mrb[4].mxu0 %v584_v49 }
 0x245   :  { %1119 = shalt.err (!%p1116_p8)
}
 0x246   :  { %s1120_s17 = scalar_lea.hbm %s1311_s7, 256 }
 0x247   :  { %p1121_p9 = scmp.ne.s32.totalorder %s1311_s7, %s1120_s17  ;;  %p1124_p10 = scmp.lt.u32.totalorder %s1120_s17, %s1311_s7 }
 0x249   :  { %p1126_p11 = pnand %p1124_p10, %p1121_p9 }
 0x24b   :  { %1129 = shalt.err (!%p1126_p11)
}
 0x24c   :  { %773 = dma.vmem_to_hbm [thread:$0]  %s771_s12, 256, %s1311_s7, [#allocation4]   ;;  %v859_v51 = vld [vmem:[%s1310_s6] ss:$0 sm:$0xff] }
 0x24d   :  { %s1171_s26 = smov [#allocation11]  }
 0x24e   :  { %s780_s27 = sshll.u32 %s1171_s26, 4  ;;  %s781_s27 = int_to_ptr.vmem [resolvable:$true] %s780_s27 }
 0x24f   :  { %s1130_s29 = scalar_lea.vmem %s781_s27, 128  ;;  %p1135_p13 = scmp.lt.s32.totalorder %s781_s27, %s781_s27 }
 0x250   :  { %p1131_p12 = scmp.ne.s32.totalorder %s781_s27, %s1130_s29  ;;  %p1136_p0 = scmp.lt.s32.totalorder %s1130_s29, %s1130_s29 }
 0x252   :  { %p1137_p1 = por %p1136_p0, %p1135_p13 }
 0x254   :  { %p1138_p2 = pnand %p1137_p1, %p1131_p12 }
 0x317   :  { %v892_v50 = vpop.f32.mrb[4].mxu0 }
 0x318   :  { %v893_v52 = vpop.f32.mrb[5].mxu0 }
 0x319   :  { %v894_v53 = vadd.f32 %v893_v52, %v892_v50  ;;  %v895_v54 = vpop.f32.mrb[6].mxu0 }
 0x31a   :  { %v896_v55 = vpop.f32.mrb[7].mxu0 }
 0x31b   :  { %v756_v56 = vadd.f32 %v894_v53, %v859_v51 }
 0x31d   :  { %763 = vst [vmem:[#allocation11] sm:$0xff] %v756_v56 }
 0x31e   :  { %1141 = shalt.err (!%p1138_p2)
}
 0x31f   :  { %s1142_s6 = scalar_lea.hbm %s1312_s8, 128 }
 0x320   :  { %p1143_p3 = scmp.ne.s32.totalorder %s1312_s8, %s1142_s6  ;;  %p1146_p4 = scmp.lt.u32.totalorder %s1142_s6, %s1312_s8 }
 0x322   :  { %p1148_p5 = pnand %p1146_p4, %p1143_p3 }
 0x324   :  { %1151 = shalt.err (!%p1148_p5)
}
 0x325   :  { %783 = dma.vmem_to_hbm [thread:$0]  %s781_s27, 128, %s1312_s8, [#allocation12]  }
 0x326   :  { %1158 = dma.done.wait [#allocation4], 256  }
 0x327   :  { %1159 = vsyncadd [#allocation4], 4294967040 }
 0x328   :  { %1160 = dma.done.wait [#allocation12], 128  }
 0x329   :  { %1161 = vsyncadd [#allocation12], 4294967168 }
 0x32a   :  { %790 = vsyncpa [#allocation3], 1 }
 0x32b   :  { %791 = vsyncpa [#allocation6], 1 }
 0x32c   :  { %792 = vsyncpa [#allocation9], 1 }
 0x32d   :  { %793 = vsyncpa [#allocation4], 1 }
 0x32e   :  { %794 = vsyncpa [#allocation12], 1 }

</bundles_post_ra>
